<compile_context>
chip_gen: v6e
topology: v6e:2x2x1
jax: 0.10.0
libtpu: 0.0.40
codegen_flags: <defaults>
</compile_context>

<pallas_src>
import math

import jax
import jax.numpy as jnp
from jax.experimental import pallas as pl
from jax.experimental.pallas import tpu as pltpu


def _round_up(a: int, b: int) -> int:
    return (a + b - 1) // b * b


def mlp_reward_kernel(x_ref, w1_ref, b1_ref, w2_ref, b2_ref, o_ref):
    # Hidden layer: (TM, E) @ (E, Hp) -> (TM, Hp), f32 accumulate, + bias, ReLU.
    h = jnp.dot(x_ref[...], w1_ref[...], preferred_element_type=jnp.float32)
    h = jnp.maximum(h + b1_ref[...], 0.0)
    # Output layer: (TM, Hp) @ (Hp, A) -> (TM, A), f32 accumulate, + bias.
    out = jnp.dot(h.astype(w2_ref.dtype), w2_ref[...],
                  preferred_element_type=jnp.float32)
    o_ref[...] = (out + b2_ref[...]).astype(o_ref.dtype)


def mlp_reward_fn(x, w1, b1, w2, b2, *, tm=1024, use_bf16=True):
    """Pallas implementation of MLPRewardFn.forward.

    x:  (..., embed_dim) -> flattened to (N, embed_dim)
    w1: (embed_dim, 64)   b1: (64,)
    w2: (64, num_actions) b2: (num_actions,)
    returns (N, num_actions) float32
    """
    embed_dim = w1.shape[0]
    hidden = w1.shape[1]
    num_actions = w2.shape[1]

    x2d = x.reshape(-1, embed_dim)
    n = x2d.shape[0]

    # --- choose the row tile ---------------------------------------------
    # Big tiles amortize per-grid-step overhead; shrink for tiny batches and
    # split large single-tile batches so both TensorCores (v7x) get work.
    tm_eff = min(tm, _round_up(n, 8))
    grid_m = -(-n // tm_eff)
    if grid_m == 1 and n > 256:
        tm_eff = _round_up(-(-n // 2), 8)
        grid_m = -(-n // tm_eff)
    n_pad = grid_m * tm_eff
    if n_pad != n:
        x2d = jnp.pad(x2d, ((0, n_pad - n), (0, 0)))

    # --- pad hidden dim to a full 128-lane width (exactness preserved) ----
    hidden_p = _round_up(hidden, 128)
    if hidden_p != hidden:
        w1 = jnp.pad(w1, ((0, 0), (0, hidden_p - hidden)))
        b1 = jnp.pad(b1, (0, hidden_p - hidden))
        w2 = jnp.pad(w2, ((0, hidden_p - hidden), (0, 0)))

    # --- dtype handling: bf16 MXU operands, f32 accumulation / bias -------
    cdt = jnp.bfloat16 if use_bf16 else x2d.dtype
    x_in = x2d.astype(cdt)
    w1_in = w1.astype(cdt)
    w2_in = w2.astype(cdt)
    b1_2d = b1.reshape(1, hidden_p).astype(jnp.float32)
    b2_2d = b2.reshape(1, num_actions).astype(jnp.float32)

    itemsize = jnp.dtype(cdt).itemsize
    cost = pl.CostEstimate(
        flops=2 * n_pad * (embed_dim * hidden_p + hidden_p * num_actions),
        transcendentals=0,
        bytes_accessed=(n_pad * embed_dim * itemsize
                        + (embed_dim * hidden_p + hidden_p * num_actions) * itemsize
                        + (hidden_p + num_actions) * 4
                        + n_pad * num_actions * 4),
    )

    out = pl.pallas_call(
        mlp_reward_kernel,
        out_shape=jax.ShapeDtypeStruct((n_pad, num_actions), jnp.float32),
        grid_spec=pl.GridSpec(
            grid=(grid_m,),
            in_specs=[
                pl.BlockSpec((tm_eff, embed_dim), lambda i: (i, 0)),      # x tile (streamed)
                pl.BlockSpec((embed_dim, hidden_p), lambda i: (0, 0)),    # W1 (VMEM-resident)
                pl.BlockSpec((1, hidden_p), lambda i: (0, 0)),            # b1
                pl.BlockSpec((hidden_p, num_actions), lambda i: (0, 0)),  # W2
                pl.BlockSpec((1, num_actions), lambda i: (0, 0)),         # b2
            ],
            out_specs=pl.BlockSpec((tm_eff, num_actions), lambda i: (i, 0)),
        ),
        compiler_params=pltpu.CompilerParams(
            dimension_semantics=("parallel",),
        ),
        cost_estimate=cost,
    )(x_in, w1_in, b1_2d, w2_in, b2_2d)

    return out[:n].reshape(-1, num_actions)


def init_params(key, embed_dim, num_actions, hidden=64):
    """Deterministic synthetic init mirroring nn_init(Linear, w_scale)."""
    k1, k2 = jax.random.split(key)
    # Layer 1: w_scale = sqrt(2)
    w1 = jax.random.normal(k1, (embed_dim, hidden), jnp.float32)
    w1 = w1 / jnp.linalg.norm(w1, axis=0, keepdims=True) * math.sqrt(2.0)
    b1 = jnp.zeros((hidden,), jnp.float32)
    # Layer 2: w_scale = 0.01
    w2 = jax.random.normal(k2, (hidden, num_actions), jnp.float32)
    w2 = w2 / jnp.linalg.norm(w2, axis=0, keepdims=True) * 0.01
    b2 = jnp.zeros((num_actions,), jnp.float32)
    return w1, b1, w2, b2


if __name__ == "__main__":
    key = jax.random.PRNGKey(0)
    kx, kp = jax.random.split(key)

    embed_dim = 32
    num_actions = 4
    batch = 16  # forward flattens leading dims to (-1, embed_dim)

    x = jax.random.normal(kx, (batch, embed_dim), jnp.float32)
    w1, b1, w2, b2 = init_params(kp, embed_dim, num_actions)

    out = mlp_reward_fn(x, w1, b1, w2, b2)
    out = jax.block_until_ready(out)
    assert out.shape == (batch, num_actions)

    # Reference 1: plain JAX with the same bf16 operand casts (tight check).
    xb = x.reshape(-1, embed_dim).astype(jnp.bfloat16)
    w1b, w2b = w1.astype(jnp.bfloat16), w2.astype(jnp.bfloat16)
    h_ref = jnp.maximum(
        jnp.dot(xb, w1b, preferred_element_type=jnp.float32) + b1, 0.0)
    ref_bf16 = jnp.dot(h_ref.astype(jnp.bfloat16), w2b,
                       preferred_element_type=jnp.float32) + b2
    assert jnp.allclose(out, ref_bf16, atol=1e-3, rtol=1e-3)

    # Reference 2: full-f32 math (loose check; bf16 operand rounding only).
    ref_f32 = jnp.maximum(x.reshape(-1, embed_dim) @ w1 + b1, 0.0) @ w2 + b2
    assert jnp.allclose(out, ref_f32, atol=5e-3, rtol=5e-2)

    # Also exercise an odd, larger batch to cover padding + multi-step grid.
    x_big = jax.random.normal(kx, (37, 9, embed_dim), jnp.float32)
    out_big = jax.block_until_ready(mlp_reward_fn(x_big, w1, b1, w2, b2))
    ref_big = (jnp.maximum(x_big.reshape(-1, embed_dim) @ w1 + b1, 0.0) @ w2 + b2)
    assert out_big.shape == (37 * 9, num_actions)
    assert jnp.allclose(out_big, ref_big, atol=5e-3, rtol=5e-2)

    print("KERNEL_OK")
</pallas_src>

<mosaic_0001>
module attributes {stable_mosaic.version = 11 : i64} {
  func.func @mlp_reward_kernel(%arg0: i32, %arg1: memref<16x32xbf16, #tpu.memory_space<vmem>>, %arg2: memref<32x128xbf16, #tpu.memory_space<vmem>>, %arg3: memref<1x128xf32, #tpu.memory_space<vmem>>, %arg4: memref<128x4xbf16, #tpu.memory_space<vmem>>, %arg5: memref<1x4xf32, #tpu.memory_space<vmem>>, %arg6: memref<16x4xf32, #tpu.memory_space<vmem>>) attributes {dimension_semantics = [#tpu.dimension_semantics<parallel>], iteration_bounds = array<i64: 1>, scalar_prefetch = 0 : i64, scratch_operands = 0 : i64, tpu.core_type = #tpu.core_type<tc>, window_params = [{transform_indices = @transform_0, window_bounds = array<i64: 16, 32>}, {pipeline_mode = #tpu.pipeline_mode<synchronous>, transform_indices = @transform_1, window_bounds = array<i64: 32, 128>}, {pipeline_mode = #tpu.pipeline_mode<synchronous>, transform_indices = @transform_2, window_bounds = array<i64: 1, 128>}, {pipeline_mode = #tpu.pipeline_mode<synchronous>, transform_indices = @transform_3, window_bounds = array<i64: 128, 4>}, {pipeline_mode = #tpu.pipeline_mode<synchronous>, transform_indices = @transform_4, window_bounds = array<i64: 1, 4>}, {transform_indices = @transform_5, window_bounds = array<i64: 16, 4>}]} {
    %c0 = arith.constant 0 : index
    %c0_0 = arith.constant 0 : index
    %0 = vector.load %arg1[%c0, %c0_0] : memref<16x32xbf16, #tpu.memory_space<vmem>>, vector<16x32xbf16>
    %c0_1 = arith.constant 0 : index
    %c0_2 = arith.constant 0 : index
    %1 = vector.load %arg2[%c0_1, %c0_2] : memref<32x128xbf16, #tpu.memory_space<vmem>>, vector<32x128xbf16>
    %cst = arith.constant dense<0.000000e+00> : vector<16x128xf32>
    %2 = tpu.matmul %0, %1, %cst {dimension_numbers = #tpu.dot_dimension_numbers<[1], [0], [0], [1], [0, 0, 1, 1], [], []>} : vector<16x32xbf16>, vector<32x128xbf16>, vector<16x128xf32> -> vector<16x128xf32>
    %c0_3 = arith.constant 0 : index
    %c0_4 = arith.constant 0 : index
    %3 = vector.load %arg3[%c0_3, %c0_4] : memref<1x128xf32, #tpu.memory_space<vmem>>, vector<1x128xf32>
    %4 = vector.broadcast %3 : vector<1x128xf32> to vector<16x128xf32>
    %5 = arith.addf %2, %4 : vector<16x128xf32>
    %cst_5 = arith.constant 0.000000e+00 : f32
    %6 = vector.broadcast %cst_5 : f32 to vector<16x128xf32>
    %7 = arith.maximumf %5, %6 : vector<16x128xf32>
    %8 = arith.truncf %7 : vector<16x128xf32> to vector<16x128xbf16>
    %c0_6 = arith.constant 0 : index
    %c0_7 = arith.constant 0 : index
    %9 = vector.load %arg4[%c0_6, %c0_7] : memref<128x4xbf16, #tpu.memory_space<vmem>>, vector<128x4xbf16>
    %cst_8 = arith.constant dense<0.000000e+00> : vector<16x4xf32>
    %10 = tpu.matmul %8, %9, %cst_8 {dimension_numbers = #tpu.dot_dimension_numbers<[1], [0], [0], [1], [0, 0, 1, 1], [], []>} : vector<16x128xbf16>, vector<128x4xbf16>, vector<16x4xf32> -> vector<16x4xf32>
    %c0_9 = arith.constant 0 : index
    %c0_10 = arith.constant 0 : index
    %11 = vector.load %arg5[%c0_9, %c0_10] : memref<1x4xf32, #tpu.memory_space<vmem>>, vector<1x4xf32>
    %12 = vector.broadcast %11 : vector<1x4xf32> to vector<16x4xf32>
    %13 = arith.addf %10, %12 : vector<16x4xf32>
    %c0_11 = arith.constant 0 : index
    %c0_12 = arith.constant 0 : index
    %14 = vector.load %arg6[%c0_11, %c0_12] : memref<16x4xf32, #tpu.memory_space<vmem>>, vector<16x4xf32>
    tpu.vector_store %arg6[%c0_11, %c0_12], %13 {strides = array<i32>} : memref<16x4xf32, #tpu.memory_space<vmem>>, vector<16x4xf32>,
    return
  }
  func.func @transform_0(%arg0: i32) -> (i32, i32) {
    %c0_i32 = arith.constant 0 : i32
    %c0_i32_0 = arith.constant 0 : i32
    return %arg0, %c0_i32 : i32, i32
  }
  func.func @transform_1(%arg0: i32) -> (i32, i32) {
    %c0_i32 = arith.constant 0 : i32
    %c0_i32_0 = arith.constant 0 : i32
    %c0_i32_1 = arith.constant 0 : i32
    return %c0_i32, %c0_i32_0 : i32, i32
  }
  func.func @transform_2(%arg0: i32) -> (i32, i32) {
    %c0_i32 = arith.constant 0 : i32
    %c0_i32_0 = arith.constant 0 : i32
    %c0_i32_1 = arith.constant 0 : i32
    return %c0_i32, %c0_i32_0 : i32, i32
  }
  func.func @transform_3(%arg0: i32) -> (i32, i32) {
    %c0_i32 = arith.constant 0 : i32
    %c0_i32_0 = arith.constant 0 : i32
    %c0_i32_1 = arith.constant 0 : i32
    return %c0_i32, %c0_i32_0 : i32, i32
  }
  func.func @transform_4(%arg0: i32) -> (i32, i32) {
    %c0_i32 = arith.constant 0 : i32
    %c0_i32_0 = arith.constant 0 : i32
    %c0_i32_1 = arith.constant 0 : i32
    return %c0_i32, %c0_i32_0 : i32, i32
  }
  func.func @transform_5(%arg0: i32) -> (i32, i32) {
    %c0_i32 = arith.constant 0 : i32
    %c0_i32_0 = arith.constant 0 : i32
    return %arg0, %c0_i32 : i32, i32
  }
}

</mosaic_0001>

<bundles_post_ra>
// kernel: tpu_custom_call.1
= control target key start
LH: loop header
LB: loop body
LE: loop exit
PB: predicated region body
PF: predicated region fallthrough
CT: control target
= control target key end

     0   :  { %v285_v0 = vmov 0.0   ;;  %vm286_vm0 = vmmov 0   ;;  %vm51_vm1 = vcmask 261120   ;;  %vm211_vm2 = vcmask 31744   ;;  %s362_s1 = inlined_call_operand.vmem [shape: bf16[32,128], index: 1, kind: input, shape index: {}]   ;;  %s363_s3 = inlined_call_operand.vmem [shape: bf16[128,4], index: 3, kind: input, shape index: {}]   ;;  %s364_s0 = inlined_call_operand.vmem [shape: bf16[16,32], index: 0, kind: input, shape index: {}]   ;;  %s365_s2 = inlined_call_operand.vmem [shape: f32[1,128], index: 2, kind: input, shape index: {}]   ;;  %s366_s4 = inlined_call_operand.vmem [shape: f32[1,4], index: 4, kind: input, shape index: {}]   ;;  %s367_s5 = inlined_call_operand.vmem [shape: f32[16,4], index: 5, kind: output, shape index: {}]  }
   0x1   :  { %244 = vmatprep.subr.bf16.mxu0 %v285_v0  ;;  %v274_v1 = vld [vmem:[%s362_s1 + $0x8] sm:$0xff]   ;;  %248 = vmatprep.mubr.msk.bf16.mxu0 %vm286_vm0, %v285_v0  ;;  %v275_v2 = vld [vmem:[%s362_s1] sm:$0xff]   ;;  %v277_v3 = vld [vmem:[%s363_s3 + $0x38] sm:$0xff]  }
   0x2   :  { %252 = vmatprep.subr.bf16.mxu1 %v285_v0  ;;  %268 = vmatprep.mubr.msk.bf16.mxu1 %vm286_vm0, %v285_v0  ;;  %v276_v4 = vld [vmem:[%s364_s0] sm:$0xff]   ;;  %v278_v5 = vld [vmem:[%s363_s3 + $0x30] sm:$0xff]   ;;  %v279_v6 = vld [vmem:[%s363_s3 + $0x28] sm:$0xff]  }
   0x3   :  { %245 = vmatpush3.bf16.msra.mxu0 %v274_v1  ;;  %253 = vmatpush3.bf16.msra.mxu1 %v277_v3  ;;  %v280_v7 = vld [vmem:[%s363_s3 + $0x20] sm:$0xff]   ;;  %v281_v8 = vld [vmem:[%s363_s3 + $0x18] sm:$0xff]   ;;  %v282_v9 = vld [vmem:[%s363_s3 + $0x10] sm:$0xff]  }
   0x4   :  { %246 = vmatprep.subr.bf16.mxu0 %v285_v0  ;;  %254 = vmatprep.subr.bf16.mxu1 %v285_v0  ;;  %v283_v10 = vld [vmem:[%s363_s3 + $0x8] sm:$0xff]   ;;  %v284_v11 = vld [vmem:[%s363_s3] sm:$0xff]  }
   0x5   :  { %v218_v12 = vld [vmem:[%s365_s2] ss:$0 sm:$0xff] }
   0x6   :  { %v223_v22 = vld [vmem:[%s366_s4] ss:$0 sm:$0xff] }
   0x7   :  { %247 = vmatpush3.bf16.msra.mxu0 %v275_v2  ;;  %255 = vmatpush3.bf16.msra.mxu1 %v278_v5 }
   0x8   :  { %256 = vmatprep.subr.bf16.mxu1 %v285_v0 }
   0xa   :  { %249 = vmatmul.mubr.msk.bf16.vlgmr.msra.gmra.mxu0 %vm51_vm1, %v276_v4 }
   0xb   :  { %257 = vmatpush3.bf16.msra.mxu1 %v279_v6 }
   0xc   :  { %258 = vmatprep.subr.bf16.mxu1 %v285_v0 }
   0xf   :  { %259 = vmatpush3.bf16.msra.mxu1 %v280_v7 }
  0x10   :  { %260 = vmatprep.subr.bf16.mxu1 %v285_v0 }
  0x13   :  { %261 = vmatpush3.bf16.msra.mxu1 %v281_v8 }
  0x14   :  { %262 = vmatprep.subr.bf16.mxu1 %v285_v0 }
  0x17   :  { %263 = vmatpush3.bf16.msra.mxu1 %v282_v9 }
  0x18   :  { %264 = vmatprep.subr.bf16.mxu1 %v285_v0 }
  0x1b   :  { %265 = vmatpush3.bf16.msra.mxu1 %v283_v10 }
  0x1c   :  { %266 = vmatprep.subr.bf16.mxu1 %v285_v0 }
  0x1f   :  { %267 = vmatpush3.bf16.msra.mxu1 %v284_v11 }
  0xca   :  { %v89_v13 = vpop.f32.mrf.mxu0 }
  0xcb   :  { %v90_v15 = vadd.f32 %v218_v12, %v89_v13 }
  0xcc   :  { %v250_v14 = vpop.f32.mrf.mxu0 }
  0xcd   :  { %v96_v19 = vmax.f32 %v90_v15, 0.0 }
  0xce   :  { %v92_v16 = vpop.f32.mrf.mxu0 }
  0xcf   :  { %v93_v17 = vadd.f32 %v218_v12, %v92_v16 }
  0xd0   :  { %v251_v18 = vpop.f32.mrf.mxu0 }
  0xd1   :  { %v97_v20 = vmax.f32 %v93_v17, 0.0 }
  0xd3   :  { %v98_v21 = vpack.c.bf16 %v97_v20, %v96_v19 }
  0xd5   :  { %269 = vmatmul.mubr.bf16.vlgmr.msra.gmra.mxu1 %v98_v21 }
 0x195   :  { %v204_v23 = vpop.f32.mrf.mxu1 }
 0x196   :  { %v205_v24 = vadd.f32 %v223_v22, %v204_v23 }
 0x197   :  { %v270_v25 = vpop.f32.mrf.mxu1 }
 0x198   :  { %212 = vst.msk [vmem:[%s367_s5] sm:$0xff] %vm211_vm2, %v205_v24 }
 0x199   :  { %v207_v26 = vpop.f32.mrf.mxu1 }
 0x19a   :  { %v208_v27 = vadd.f32 %v223_v22, %v207_v26 }
 0x19b   :  { %v271_v28 = vpop.f32.mrf.mxu1 }
 0x19c   :  { %213 = vst.msk [vmem:[%s367_s5 + $0x8] sm:$0xff] %vm211_vm2, %v208_v27 }

</bundles_post_ra>
